<compile_context>
chip_gen: v6e
topology: v6e:2x2x1
jax: 0.10.0
libtpu: 0.0.40
codegen_flags: <defaults>
</compile_context>

<pallas_src>
import jax
import jax.numpy as jnp
import numpy as np
from jax.experimental import pallas as pl
from jax.experimental.pallas import tpu as pltpu

# ---- module hyper-parameters (AnglELoss.__init__ defaults) ----
COSINE_W = 0.0      # cosine branch of forward() is skipped (weight == 0)
IBN_W = 20.0
ANGLE_W = 1.0
IBN_TAU = 20.0
ANGLE_TAU = 20.0
BIG = 1e12
NORM_EPS = 1e-12
NEG_BIG = -1e30     # finite "-inf" for running maxima (avoids inf/nan arithmetic)


# =============================================================================
# In-batch-negative (contrastive) loss: streaming flash-style kernel
# =============================================================================
def _ibn_kernel(lab_col_ref, lab_row_ref, inv_col_ref, inv_row_ref,
                yp_row_ref, yp_col_ref, out_ref,
                m_scr, l_scr, t_scr, s_scr):
    i = pl.program_id(0)                       # row-block index ("parallel")
    j = pl.program_id(1)                       # col-block index (reduction, last)
    nj = pl.num_programs(1)
    TR, D = yp_row_ref.shape
    TC = yp_col_ref.shape[0]

    # -------- per-row-block init (scratch lifetime == one row block) --------
    @pl.when(j == 0)
    def _():
        m_scr[...] = jnp.full(m_scr.shape, NEG_BIG, jnp.float32)
        l_scr[...] = jnp.zeros_like(l_scr)
        t_scr[...] = jnp.zeros_like(t_scr)
        s_scr[...] = jnp.zeros_like(s_scr)

    # ---- raw block matmul on UN-normalized embeddings (MXU, f32 acc) ----
    raw = jax.lax.dot_general(
        yp_row_ref[...], yp_col_ref[...], (((1,), (1,)), ((), ())),
        preferred_element_type=jnp.float32)                      # [TR, TC]

    # fold L2 normalization + tau into the f32 accumulator (rank-1 scaling)
    inv_r = inv_col_ref[...] * IBN_TAU                           # [TR, 1]
    inv_c = inv_row_ref[...]                                     # [1, TC]
    sims = raw * inv_r * inv_c                                   # [TR, TC]

    # The diagonal and the positive-pair columns (swap_r) only fall inside
    # column blocks whose range intersects this row block's range (pairs never
    # straddle row blocks because TR is even), so gate all mask/target work.
    row_lo = i * TR
    col_lo = j * TC
    overlap = jnp.logical_and(col_lo < row_lo + TR, row_lo < col_lo + TC)

    @pl.when(overlap)
    def _():
        gr = jax.lax.broadcasted_iota(jnp.int32, (TR, 1), 0) + row_lo
        gc = jax.lax.broadcasted_iota(jnp.int32, (1, TC), 1) + col_lo
        diag = gr == gc                                          # [TR, TC]
        s_blk = jnp.where(diag, sims - BIG * IBN_TAU, sims)

        lab_r = lab_col_ref[...]                                 # [TR, 1] int32
        lab_c = lab_row_ref[...]                                 # [1, TC] int32
        swap_r = gr + 1 - 2 * (gr % 2)
        idxs_2 = swap_r * lab_r + jnp.where(lab_r == 0, -1, 0)   # [TR, 1]
        idxs_1 = gc * lab_c + jnp.where(lab_c == 0, -2, 0)       # [1, TC]
        target = (idxs_1 == idxs_2).astype(jnp.float32)          # [TR, TC]

        t_scr[...] += jnp.sum(target, axis=1, keepdims=True)
        s_scr[...] += jnp.sum(s_blk * target, axis=1, keepdims=True)

        blk_max = jnp.max(s_blk, axis=1, keepdims=True)
        m_new = jnp.maximum(m_scr[...], blk_max)
        l_scr[...] = (l_scr[...] * jnp.exp(m_scr[...] - m_new)
                      + jnp.sum(jnp.exp(s_blk - m_new), axis=1, keepdims=True))
        m_scr[...] = m_new

    @pl.when(jnp.logical_not(overlap))
    def _():
        # fast path: no diagonal, no positive pairs in this block
        blk_max = jnp.max(sims, axis=1, keepdims=True)
        m_new = jnp.maximum(m_scr[...], blk_max)
        l_scr[...] = (l_scr[...] * jnp.exp(m_scr[...] - m_new)
                      + jnp.sum(jnp.exp(sims - m_new), axis=1, keepdims=True))
        m_scr[...] = m_new

    # -------- per-row-block finalize: lane-dense partial sum for this i --------
    @pl.when(j == nj - 1)
    def _():
        lse = m_scr[...] + jnp.log(l_scr[...])                   # [TR, 1]
        ce = lse * t_scr[...] - s_scr[...]    # = -sum_c log_softmax * target
        blk = jnp.sum(ce, axis=0, keepdims=True)                 # (1, 1)
        out_ref[...] = jnp.broadcast_to(blk, out_ref.shape)      # (1, 1, 128)


# =============================================================================
# Angle loss: tiny streaming kernel over de-interleaved pairs.
# With 0/1 zigzag labels the masked pairwise logsumexp factorizes:
#   loss = log(1 + A*B),  A = sum_{lab==0} exp(y),  B = sum_{lab==1} exp(-y)
# =============================================================================
def _angle_kernel(lab_ref, ev_ref, od_ref, out_ref,
                  ma_scr, sa_scr, mb_scr, sb_scr):
    p = pl.program_id(0)
    npg = pl.num_programs(0)
    TP, D = ev_ref.shape
    H = D // 2

    @pl.when(p == 0)
    def _():
        ma_scr[...] = jnp.full(ma_scr.shape, NEG_BIG, jnp.float32)
        mb_scr[...] = jnp.full(mb_scr.shape, NEG_BIG, jnp.float32)
        sa_scr[...] = jnp.zeros_like(sa_scr)
        sb_scr[...] = jnp.zeros_like(sb_scr)

    ev = ev_ref[...].astype(jnp.float32)            # even rows  (a | b)
    od = od_ref[...].astype(jnp.float32)            # odd rows   (c | d)

    sum_ab = jnp.sum(ev * ev, axis=1, keepdims=True)             # |z1|^2
    z = jnp.sum(od * od, axis=1, keepdims=True)                  # |z2|^2
    s1 = jnp.sum(ev * od, axis=1, keepdims=True)                 # sum(a*c + b*d)
    s2 = jnp.sum(ev[:, H:] * od[:, :H] - ev[:, :H] * od[:, H:],
                 axis=1, keepdims=True)                          # sum(b*c - a*d)
    # pooled * tau;  dw / (z * dz) == rsqrt(z) * rsqrt(sum_ab)
    y = (jnp.abs(s1 + s2) * jax.lax.rsqrt(z)
         * jax.lax.rsqrt(sum_ab)) * ANGLE_TAU                    # [TP, 1]

    lab = lab_ref[...]                                           # [TP, 1] int32
    is0 = lab == 0
    is1 = jnp.logical_not(is0)

    # A = sum_{lab==0} exp(+y): online max with explicitly masked block sums
    ya = jnp.where(is0, y, NEG_BIG)
    new_ma = jnp.maximum(ma_scr[...], jnp.max(ya, axis=0, keepdims=True))
    sa_scr[...] = (sa_scr[...] * jnp.exp(ma_scr[...] - new_ma)
                   + jnp.sum(jnp.where(is0, jnp.exp(ya - new_ma), 0.0),
                             axis=0, keepdims=True))
    ma_scr[...] = new_ma

    # B = sum_{lab==1} exp(-y)
    yb = jnp.where(is1, -y, NEG_BIG)
    new_mb = jnp.maximum(mb_scr[...], jnp.max(yb, axis=0, keepdims=True))
    sb_scr[...] = (sb_scr[...] * jnp.exp(mb_scr[...] - new_mb)
                   + jnp.sum(jnp.where(is1, jnp.exp(yb - new_mb), 0.0),
                             axis=0, keepdims=True))
    mb_scr[...] = new_mb

    @pl.when(p == npg - 1)
    def _():
        log_a = ma_scr[...] + jnp.log(sa_scr[...])   # -inf iff no lab==0 pair
        log_b = mb_scr[...] + jnp.log(sb_scr[...])   # -inf iff no lab==1 pair
        t = log_a + log_b                            # log(A*B)
        m0 = jnp.maximum(t, 0.0)
        # logsumexp over concat([0], masked pairwise diffs) == log(1 + A*B)
        out_ref[...] = m0 + jnp.log(jnp.exp(0.0 - m0) + jnp.exp(t - m0))


# =============================================================================
# Tile / VMEM-budget helpers
# =============================================================================
def _vmem_capacity_bytes():
    try:
        info = pltpu.get_tpu_info()
        cap = getattr(info, "vmem_capacity_bytes", None)
        if cap:
            return int(cap)
    except Exception:
        pass
    return 64 * 1024 * 1024     # conservative fallback: v7x per-core VMEM


def _pick_ibn_tiles(N, D, itemsize, max_tr=None, max_tc=None):
    cap = _vmem_capacity_bytes()
    vmem_limit = int(0.75 * cap)            # leave compiler / pipeline headroom
    budget = vmem_limit // 2                # what the tile arithmetic may consume

    # TR must be even (pairs may not straddle row blocks) and a multiple of 8.
    tr_cands = [t for t in (1024, 512, 256, 128, 64, 32, 16, 8) if N % t == 0] or [N]
    # (1, TC) label / inv-norm blocks need TC % 128 == 0 or TC == N.
    tc_cands = [t for t in (1024, 512, 256, 128) if N % t == 0] or [N]
    if max_tr is not None:
        tr_cands = [t for t in tr_cands if t <= max_tr] or [tr_cands[-1]]
    if max_tc is not None:
        tc_cands = [t for t in tc_cands if t <= max_tc] or [tc_cands[-1]]

    def need(tr, tc):
        streams = 2 * (tr + tc) * D * itemsize      # double-buffered embedding streams
        small = 2 * (tr + tc) * 2 * 4               # labels + inv norms (dbl-buffered)
        temps = 6 * tr * tc * 4                     # f32 block temporaries (generous)
        scratch = 4 * tr * 4 + 2 * 128 * 4          # row stats + output block
        return streams + small + temps + scratch

    for tr in tr_cands:                             # maximize TR first (cuts the
        for tc in tc_cands:                         # N/TR re-reads of the col stream)
            if need(tr, tc) <= budget:
                return tr, tc, vmem_limit
    return tr_cands[-1], tc_cands[-1], vmem_limit


def _pick_pair_tile(P):
    for t in (512, 256, 128, 64, 32, 16, 8):
        if P % t == 0:
            return t
    return P


# =============================================================================
# Forward wrapper (AnglELoss.forward with default weights)
# =============================================================================
def anglel_loss_forward(sentence_1, sentence_2, cosines=None, sim=None,
                        max_tr=None, max_tc=None):
    """`cosines` / `sim` are accepted for signature parity but unused (as in torch).
    Labels are assumed to be zigzag 0/1 pair labels (the module's documented use)."""
    yp = sentence_2                                   # [N, D] (f32 or bf16)
    N, D = yp.shape
    assert N % 2 == 0 and D % 2 == 0, "zigzag pairs need even N; chunk(2) needs even D"
    labels = sentence_1.reshape(N).astype(jnp.int32)  # 0/1 zigzag pair labels

    # ---- one cheap O(N*D) pass: inverse L2 norms, folded post-matmul in-kernel ----
    yp_f32 = yp.astype(jnp.float32)
    inv = jax.lax.rsqrt(jnp.maximum(jnp.sum(yp_f32 * yp_f32, axis=1, keepdims=True),
                                    NORM_EPS * NORM_EPS))          # [N, 1] f32

    TR, TC, vmem_limit = _pick_ibn_tiles(N, D, yp.dtype.itemsize,
                                         max_tr=max_tr, max_tc=max_tc)
    ni, nj = N // TR, N // TC

    ibn_partials = pl.pallas_call(
        _ibn_kernel,
        out_shape=jax.ShapeDtypeStruct((ni, 1, 128), jnp.float32),
        grid=(ni, nj),
        in_specs=[
            pl.BlockSpec((TR, 1), lambda i, j: (i, 0)),   # labels, row view
            pl.BlockSpec((1, TC), lambda i, j: (0, j)),   # labels, col view
            pl.BlockSpec((TR, 1), lambda i, j: (i, 0)),   # inv norms, row view
            pl.BlockSpec((1, TC), lambda i, j: (0, j)),   # inv norms, col view
            pl.BlockSpec((TR, D), lambda i, j: (i, 0)),   # embeddings, row stream
            pl.BlockSpec((TC, D), lambda i, j: (j, 0)),   # embeddings, col stream
        ],
        out_specs=pl.BlockSpec((1, 1, 128), lambda i, j: (i, 0, 0)),
        scratch_shapes=[
            pltpu.VMEM((TR, 1), jnp.float32),   # running row max
            pltpu.VMEM((TR, 1), jnp.float32),   # running row sum(exp)
            pltpu.VMEM((TR, 1), jnp.float32),   # running sum(target)
            pltpu.VMEM((TR, 1), jnp.float32),   # running sum(sims * target)
        ],
        compiler_params=pltpu.CompilerParams(
            # Row axis emits independent per-block partials -> parallel (v7x
            # megacore); column axis is the online-softmax reduction -> arbitrary.
            dimension_semantics=("parallel", "arbitrary"),
            vmem_limit_bytes=vmem_limit,
        ),
    )(labels.reshape(N, 1), labels.reshape(1, N), inv, inv.reshape(1, N), yp, yp)
    ibn_loss = jnp.sum(ibn_partials[:, 0, 0]) / N

    # ---- angle branch: tiny streaming kernel over de-interleaved pairs ----
    P = N // 2
    ev = yp[0::2]                                   # [P, D] even rows
    od = yp[1::2]                                   # [P, D] odd rows
    lab_pair = labels[0::2].reshape(P, 1)
    TP = _pick_pair_tile(P)

    angle = pl.pallas_call(
        _angle_kernel,
        out_shape=jax.ShapeDtypeStruct((1, 1), jnp.float32),
        grid=(P // TP,),
        in_specs=[
            pl.BlockSpec((TP, 1), lambda p: (p, 0)),
            pl.BlockSpec((TP, D), lambda p: (p, 0)),
            pl.BlockSpec((TP, D), lambda p: (p, 0)),
        ],
        out_specs=pl.BlockSpec((1, 1), lambda p: (0, 0)),
        scratch_shapes=[
            pltpu.VMEM((1, 1), jnp.float32),    # max  of  y over label==0
            pltpu.VMEM((1, 1), jnp.float32),    # sumexp     over label==0
            pltpu.VMEM((1, 1), jnp.float32),    # max  of -y over label==1
            pltpu.VMEM((1, 1), jnp.float32),    # sumexp     over label==1
        ],
        compiler_params=pltpu.CompilerParams(
            dimension_semantics=("arbitrary",)),
    )(lab_pair, ev, od)
    angle_loss = angle[0, 0]

    # cosine_w == 0.0 -> the cosine branch of forward() is skipped.
    return IBN_W * ibn_loss + ANGLE_W * angle_loss


# =============================================================================
# Pure-JAX reference mirroring the PyTorch forward (for correctness checks)
# =============================================================================
def _reference_forward(sentence_1, sentence_2):
    labels, yp = sentence_1, sentence_2
    N, D = yp.shape
    # in_batch_negative_loss
    idxs = jnp.arange(N)
    yt = labels.astype(jnp.int32)
    idxs_1 = idxs[None, :] * yt.T + (yt.T == 0).astype(jnp.int32) * -2
    idxs_2 = (idxs + 1 - idxs % 2 * 2)[:, None] * yt + (yt == 0).astype(jnp.int32) * -1
    target = (idxs_1 == idxs_2).astype(jnp.float32)
    ypn = yp / jnp.maximum(jnp.linalg.norm(yp, axis=1, keepdims=True), NORM_EPS)
    sims = jnp.matmul(ypn, ypn.T, precision=jax.lax.Precision.HIGHEST)
    sims = (sims - jnp.eye(N) * BIG) * IBN_TAU
    ibn = (-(jax.nn.log_softmax(sims, axis=1) * target).sum(axis=1)).mean()
    # angle_loss
    ytp = labels[::2, 0]
    mask = (ytp[:, None] < ytp[None, :]).astype(jnp.float32)
    re_, im_ = jnp.split(yp, 2, axis=1)
    a, b, c, d = re_[::2], im_[::2], re_[1::2], im_[1::2]
    z = jnp.sum(c ** 2 + d ** 2, axis=1, keepdims=True)
    re = (a * c + b * d) / z
    im = (b * c - a * d) / z
    dz = jnp.sqrt(jnp.sum(a ** 2 + b ** 2, axis=1, keepdims=True))
    dw = jnp.sqrt(jnp.sum(c ** 2 + d ** 2, axis=1, keepdims=True))
    re = re / (dz / dw)
    im = im / (dz / dw)
    pooled = jnp.sum(jnp.concatenate([re, im], axis=1), axis=1)
    y = jnp.abs(pooled) * ANGLE_TAU
    flat = (y[:, None] - y[None, :] - (1.0 - mask) * BIG).reshape(-1)
    flat = jnp.concatenate([jnp.zeros((1,), jnp.float32), flat])
    angle = jax.nn.logsumexp(flat)
    return IBN_W * ibn + ANGLE_W * angle


if __name__ == "__main__":
    def make_case(case_key, n, d):
        k_lab, k_emb = jax.random.split(case_key)
        p = n // 2
        # zigzag labels: same 0/1 label for both elements of each pair
        pair_labels = jax.random.bernoulli(k_lab, 0.5, (p,)).astype(jnp.float32)
        sentence_1 = jnp.repeat(pair_labels, 2).reshape(n, 1)       # y_true [n, 1]
        sentence_2 = jax.random.normal(k_emb, (n, d), jnp.float32)  # y_pred [n, d]
        return sentence_1, sentence_2

    key = jax.random.PRNGKey(0)
    k1, k2 = jax.random.split(key)

    # case 1: tiny, single-block path (grid (1, 1) everywhere)
    s1, s2 = make_case(k1, 8, 32)
    loss = jax.block_until_ready(anglel_loss_forward(s1, s2))
    ref = jax.block_until_ready(_reference_forward(s1, s2))
    np.testing.assert_allclose(np.asarray(loss), np.asarray(ref), rtol=5e-2, atol=5e-2)

    # case 2: force a 2x2 grid to exercise the streaming / overlap-gated path
    s1, s2 = make_case(k2, 256, 64)
    loss = jax.block_until_ready(
        anglel_loss_forward(s1, s2, max_tr=128, max_tc=128))
    ref = jax.block_until_ready(_reference_forward(s1, s2))
    np.testing.assert_allclose(np.asarray(loss), np.asarray(ref), rtol=5e-2, atol=5e-2)

    print("KERNEL_OK")
</pallas_src>

<mosaic_0001>
module attributes {stable_mosaic.version = 11 : i64} {
  func.func @_ibn_kernel(%arg0: i32, %arg1: i32, %arg2: memref<8x1xi32, #tpu.memory_space<vmem>>, %arg3: memref<1x8xi32, #tpu.memory_space<vmem>>, %arg4: memref<8x1xf32, #tpu.memory_space<vmem>>, %arg5: memref<1x8xf32, #tpu.memory_space<vmem>>, %arg6: memref<8x32xf32, #tpu.memory_space<vmem>>, %arg7: memref<8x32xf32, #tpu.memory_space<vmem>>, %arg8: memref<1x1x128xf32, #tpu.memory_space<vmem>>, %arg9: memref<8x1xf32, #tpu.memory_space<vmem>>, %arg10: memref<8x1xf32, #tpu.memory_space<vmem>>, %arg11: memref<8x1xf32, #tpu.memory_space<vmem>>, %arg12: memref<8x1xf32, #tpu.memory_space<vmem>>) attributes {dimension_semantics = [#tpu.dimension_semantics<parallel>, #tpu.dimension_semantics<arbitrary>], iteration_bounds = array<i64: 1, 1>, scalar_prefetch = 0 : i64, scratch_operands = 4 : i64, tpu.core_type = #tpu.core_type<tc>, window_params = [{transform_indices = @transform_0, window_bounds = array<i64: 8, 1>}, {transform_indices = @transform_1, window_bounds = array<i64: 1, 8>}, {transform_indices = @transform_2, window_bounds = array<i64: 8, 1>}, {transform_indices = @transform_3, window_bounds = array<i64: 1, 8>}, {transform_indices = @transform_4, window_bounds = array<i64: 8, 32>}, {transform_indices = @transform_5, window_bounds = array<i64: 8, 32>}, {transform_indices = @transform_6, window_bounds = array<i64: 1, 1, 128>}]} {
    %c0_i32 = arith.constant 0 : i32
    %0 = arith.cmpi eq, %arg1, %c0_i32 : i32
    %1 = arith.extui %0 : i1 to i32
    %c0_i32_0 = arith.constant 0 : i32
    %2 = arith.cmpi ne, %1, %c0_i32_0 : i32
    scf.if %2 {
      %cst_16 = arith.constant -1.000000e+30 : f32
      %29 = vector.broadcast %cst_16 : f32 to vector<8x1xf32>
      %c0_17 = arith.constant 0 : index
      %c0_18 = arith.constant 0 : index
      %30 = vector.load %arg9[%c0_17, %c0_18] : memref<8x1xf32, #tpu.memory_space<vmem>>, vector<8x1xf32>
      tpu.vector_store %arg9[%c0_17, %c0_18], %29 {strides = array<i32>} : memref<8x1xf32, #tpu.memory_space<vmem>>, vector<8x1xf32>,
      %cst_19 = arith.constant 0.000000e+00 : f32
      %31 = vector.broadcast %cst_19 : f32 to vector<8x1xf32>
      %c0_20 = arith.constant 0 : index
      %c0_21 = arith.constant 0 : index
      %32 = vector.load %arg10[%c0_20, %c0_21] : memref<8x1xf32, #tpu.memory_space<vmem>>, vector<8x1xf32>
      tpu.vector_store %arg10[%c0_20, %c0_21], %31 {strides = array<i32>} : memref<8x1xf32, #tpu.memory_space<vmem>>, vector<8x1xf32>,
      %cst_22 = arith.constant 0.000000e+00 : f32
      %33 = vector.broadcast %cst_22 : f32 to vector<8x1xf32>
      %c0_23 = arith.constant 0 : index
      %c0_24 = arith.constant 0 : index
      %34 = vector.load %arg11[%c0_23, %c0_24] : memref<8x1xf32, #tpu.memory_space<vmem>>, vector<8x1xf32>
      tpu.vector_store %arg11[%c0_23, %c0_24], %33 {strides = array<i32>} : memref<8x1xf32, #tpu.memory_space<vmem>>, vector<8x1xf32>,
      %cst_25 = arith.constant 0.000000e+00 : f32
      %35 = vector.broadcast %cst_25 : f32 to vector<8x1xf32>
      %c0_26 = arith.constant 0 : index
      %c0_27 = arith.constant 0 : index
      %36 = vector.load %arg12[%c0_26, %c0_27] : memref<8x1xf32, #tpu.memory_space<vmem>>, vector<8x1xf32>
      tpu.vector_store %arg12[%c0_26, %c0_27], %35 {strides = array<i32>} : memref<8x1xf32, #tpu.memory_space<vmem>>, vector<8x1xf32>,
    } else {
    }
    %c0 = arith.constant 0 : index
    %c0_1 = arith.constant 0 : index
    %3 = vector.load %arg6[%c0, %c0_1] : memref<8x32xf32, #tpu.memory_space<vmem>>, vector<8x32xf32>
    %c0_2 = arith.constant 0 : index
    %c0_3 = arith.constant 0 : index
    %4 = vector.load %arg7[%c0_2, %c0_3] : memref<8x32xf32, #tpu.memory_space<vmem>>, vector<8x32xf32>
    %cst = arith.constant dense<0.000000e+00> : vector<8x8xf32>
    %5 = tpu.matmul %3, %4, %cst {dimension_numbers = #tpu.dot_dimension_numbers<[1], [1], [0], [0], [0, 0, 1, 0], [], []>} : vector<8x32xf32>, vector<8x32xf32>, vector<8x8xf32> -> vector<8x8xf32>
    %c0_4 = arith.constant 0 : index
    %c0_5 = arith.constant 0 : index
    %6 = vector.load %arg4[%c0_4, %c0_5] : memref<8x1xf32, #tpu.memory_space<vmem>>, vector<8x1xf32>
    %cst_6 = arith.constant 2.000000e+01 : f32
    %7 = vector.broadcast %cst_6 : f32 to vector<8x1xf32>
    %8 = arith.mulf %6, %7 : vector<8x1xf32>
    %c0_7 = arith.constant 0 : index
    %c0_8 = arith.constant 0 : index
    %9 = vector.load %arg5[%c0_7, %c0_8] : memref<1x8xf32, #tpu.memory_space<vmem>>, vector<1x8xf32>
    %10 = vector.broadcast %8 : vector<8x1xf32> to vector<8x8xf32>
    %11 = arith.mulf %5, %10 : vector<8x8xf32>
    %12 = vector.broadcast %9 : vector<1x8xf32> to vector<8x8xf32>
    %13 = arith.mulf %11, %12 : vector<8x8xf32>
    %c8_i32 = arith.constant 8 : i32
    %14 = arith.muli %arg0, %c8_i32 : i32
    %c8_i32_9 = arith.constant 8 : i32
    %15 = arith.muli %arg1, %c8_i32_9 : i32
    %c8_i32_10 = arith.constant 8 : i32
    %16 = arith.addi %14, %c8_i32_10 : i32
    %17 = arith.cmpi slt, %15, %16 : i32
    %c8_i32_11 = arith.constant 8 : i32
    %18 = arith.addi %15, %c8_i32_11 : i32
    %19 = arith.cmpi slt, %14, %18 : i32
    %20 = arith.andi %17, %19 : i1
    %21 = arith.extui %20 : i1 to i32
    %c0_i32_12 = arith.constant 0 : i32
    %22 = arith.cmpi ne, %21, %c0_i32_12 : i32
    scf.if %22 {
      %29 = tpu.iota {dimensions = array<i32: 0>} : vector<8x1xi32>
      %30 = vector.broadcast %14 : i32 to vector<8x1xi32>
      %31 = arith.addi %29, %30 : vector<8x1xi32>
      %32 = tpu.iota {dimensions = array<i32: 1>} : vector<1x8xi32>
      %33 = vector.broadcast %15 : i32 to vector<1x8xi32>
      %34 = arith.addi %32, %33 : vector<1x8xi32>
      %35 = vector.broadcast %31 : vector<8x1xi32> to vector<8x8xi32>
      %36 = vector.broadcast %34 : vector<1x8xi32> to vector<8x8xi32>
      %37 = arith.cmpi eq, %35, %36 : vector<8x8xi32>
      %cst_16 = arith.constant 2.000000e+13 : f32
      %38 = vector.broadcast %cst_16 : f32 to vector<8x8xf32>
      %39 = arith.subf %13, %38 : vector<8x8xf32>
      %40 = arith.select %37, %39, %13 : vector<8x8xi1>, vector<8x8xf32>
      %c0_17 = arith.constant 0 : index
      %c0_18 = arith.constant 0 : index
      %41 = vector.load %arg2[%c0_17, %c0_18] : memref<8x1xi32, #tpu.memory_space<vmem>>, vector<8x1xi32>
      %c0_19 = arith.constant 0 : index
      %c0_20 = arith.constant 0 : index
      %42 = vector.load %arg3[%c0_19, %c0_20] : memref<1x8xi32, #tpu.memory_space<vmem>>, vector<1x8xi32>
      %c1_i32 = arith.constant 1 : i32
      %43 = vector.broadcast %c1_i32 : i32 to vector<8x1xi32>
      %44 = arith.addi %31, %43 : vector<8x1xi32>
      %c2_i32 = arith.constant 2 : i32
      %c0_i32_21 = arith.constant 0 : i32
      %45 = arith.cmpi eq, %c2_i32, %c0_i32_21 : i32
      %c1_i32_22 = arith.constant 1 : i32
      %46 = arith.select %45, %c1_i32_22, %c2_i32 : i32
      %47 = vector.broadcast %46 : i32 to vector<8x1xi32>
      %48 = arith.remsi %31, %47 : vector<8x1xi32>
      %c0_i32_23 = arith.constant 0 : i32
      %49 = vector.broadcast %c0_i32_23 : i32 to vector<8x1xi32>
      %50 = arith.cmpi ne, %48, %49 : vector<8x1xi32>
      %c0_i32_24 = arith.constant 0 : i32
      %51 = vector.broadcast %c0_i32_24 : i32 to vector<8x1xi32>
      %52 = arith.cmpi slt, %48, %51 : vector<8x1xi32>
      %c0_i32_25 = arith.constant 0 : i32
      %53 = arith.cmpi slt, %46, %c0_i32_25 : i32
      %54 = vector.broadcast %53 : i1 to vector<8x1xi1>
      %55 = vector.broadcast %54 : vector<8x1xi1> to vector<8x1xi1>
      %56 = arith.xori %52, %55 : vector<8x1xi1>
      %57 = arith.andi %56, %50 : vector<8x1xi1>
      %58 = vector.broadcast %46 : i32 to vector<8x1xi32>
      %59 = arith.addi %48, %58 : vector<8x1xi32>
      %60 = arith.select %57, %59, %48 : vector<8x1xi1>, vector<8x1xi32>
      %c2_i32_26 = arith.constant 2 : i32
      %61 = vector.broadcast %c2_i32_26 : i32 to vector<8x1xi32>
      %62 = arith.muli %61, %60 : vector<8x1xi32>
      %63 = arith.subi %44, %62 : vector<8x1xi32>
      %64 = arith.muli %63, %41 : vector<8x1xi32>
      %c0_i32_27 = arith.constant 0 : i32
      %65 = vector.broadcast %c0_i32_27 : i32 to vector<8x1xi32>
      %66 = arith.cmpi eq, %41, %65 : vector<8x1xi32>
      %c-1_i32 = arith.constant -1 : i32
      %c0_i32_28 = arith.constant 0 : i32
      %67 = vector.broadcast %c-1_i32 : i32 to vector<8x1xi32>
      %68 = vector.broadcast %c0_i32_28 : i32 to vector<8x1xi32>
      %69 = arith.select %66, %67, %68 : vector<8x1xi1>, vector<8x1xi32>
      %70 = arith.addi %64, %69 : vector<8x1xi32>
      %71 = arith.muli %34, %42 : vector<1x8xi32>
      %c0_i32_29 = arith.constant 0 : i32
      %72 = vector.broadcast %c0_i32_29 : i32 to vector<1x8xi32>
      %73 = arith.cmpi eq, %42, %72 : vector<1x8xi32>
      %c-2_i32 = arith.constant -2 : i32
      %c0_i32_30 = arith.constant 0 : i32
      %74 = vector.broadcast %c-2_i32 : i32 to vector<1x8xi32>
      %75 = vector.broadcast %c0_i32_30 : i32 to vector<1x8xi32>
      %76 = arith.select %73, %74, %75 : vector<1x8xi1>, vector<1x8xi32>
      %77 = arith.addi %71, %76 : vector<1x8xi32>
      %78 = vector.broadcast %77 : vector<1x8xi32> to vector<8x8xi32>
      %79 = vector.broadcast %70 : vector<8x1xi32> to vector<8x8xi32>
      %80 = arith.cmpi eq, %78, %79 : vector<8x8xi32>
      %81 = arith.extui %80 : vector<8x8xi1> to vector<8x8xi32>
      %82 = arith.sitofp %81 : vector<8x8xi32> to vector<8x8xf32>
      %c0_31 = arith.constant 0 : index
      %c0_32 = arith.constant 0 : index
      %83 = vector.load %arg11[%c0_31, %c0_32] : memref<8x1xf32, #tpu.memory_space<vmem>>, vector<8x1xf32>
      %cst_33 = arith.constant dense<0.000000e+00> : vector<8xf32>
      %84 = vector.multi_reduction <add>, %82, %cst_33 [1] : vector<8x8xf32> to vector<8xf32>
      %85 = vector.shape_cast %84 : vector<8xf32> to vector<8x1xf32>
      %86 = arith.addf %83, %85 : vector<8x1xf32>
      %c0_34 = arith.constant 0 : index
      %c0_35 = arith.constant 0 : index
      %87 = vector.load %arg11[%c0_34, %c0_35] : memref<8x1xf32, #tpu.memory_space<vmem>>, vector<8x1xf32>
      tpu.vector_store %arg11[%c0_34, %c0_35], %86 {strides = array<i32>} : memref<8x1xf32, #tpu.memory_space<vmem>>, vector<8x1xf32>,
      %c0_36 = arith.constant 0 : index
      %c0_37 = arith.constant 0 : index
      %88 = vector.load %arg12[%c0_36, %c0_37] : memref<8x1xf32, #tpu.memory_space<vmem>>, vector<8x1xf32>
      %89 = arith.mulf %40, %82 : vector<8x8xf32>
      %cst_38 = arith.constant dense<0.000000e+00> : vector<8xf32>
      %90 = vector.multi_reduction <add>, %89, %cst_38 [1] : vector<8x8xf32> to vector<8xf32>
      %91 = vector.shape_cast %90 : vector<8xf32> to vector<8x1xf32>
      %92 = arith.addf %88, %91 : vector<8x1xf32>
      %c0_39 = arith.constant 0 : index
      %c0_40 = arith.constant 0 : index
      %93 = vector.load %arg12[%c0_39, %c0_40] : memref<8x1xf32, #tpu.memory_space<vmem>>, vector<8x1xf32>
      tpu.vector_store %arg12[%c0_39, %c0_40], %92 {strides = array<i32>} : memref<8x1xf32, #tpu.memory_space<vmem>>, vector<8x1xf32>,
      %cst_41 = arith.constant dense<0xFF800000> : vector<8xf32>
      %94 = vector.multi_reduction <maximumf>, %40, %cst_41 [1] : vector<8x8xf32> to vector<8xf32>
      %95 = vector.shape_cast %94 : vector<8xf32> to vector<8x1xf32>
      %c0_42 = arith.constant 0 : index
      %c0_43 = arith.constant 0 : index
      %96 = vector.load %arg9[%c0_42, %c0_43] : memref<8x1xf32, #tpu.memory_space<vmem>>, vector<8x1xf32>
      %97 = arith.maximumf %96, %95 : vector<8x1xf32>
      %c0_44 = arith.constant 0 : index
      %c0_45 = arith.constant 0 : index
      %98 = vector.load %arg10[%c0_44, %c0_45] : memref<8x1xf32, #tpu.memory_space<vmem>>, vector<8x1xf32>
      %c0_46 = arith.constant 0 : index
      %c0_47 = arith.constant 0 : index
      %99 = vector.load %arg9[%c0_46, %c0_47] : memref<8x1xf32, #tpu.memory_space<vmem>>, vector<8x1xf32>
      %100 = arith.subf %99, %97 : vector<8x1xf32>
      %101 = math.exp %100 : vector<8x1xf32>
      %102 = arith.mulf %98, %101 : vector<8x1xf32>
      %103 = vector.broadcast %97 : vector<8x1xf32> to vector<8x8xf32>
      %104 = arith.subf %40, %103 : vector<8x8xf32>
      %105 = math.exp %104 : vector<8x8xf32>
      %cst_48 = arith.constant dense<0.000000e+00> : vector<8xf32>
      %106 = vector.multi_reduction <add>, %105, %cst_48 [1] : vector<8x8xf32> to vector<8xf32>
      %107 = vector.shape_cast %106 : vector<8xf32> to vector<8x1xf32>
      %108 = arith.addf %102, %107 : vector<8x1xf32>
      %c0_49 = arith.constant 0 : index
      %c0_50 = arith.constant 0 : index
      %109 = vector.load %arg10[%c0_49, %c0_50] : memref<8x1xf32, #tpu.memory_space<vmem>>, vector<8x1xf32>
      tpu.vector_store %arg10[%c0_49, %c0_50], %108 {strides = array<i32>} : memref<8x1xf32, #tpu.memory_space<vmem>>, vector<8x1xf32>,
      %c0_51 = arith.constant 0 : index
      %c0_52 = arith.constant 0 : index
      %110 = vector.load %arg9[%c0_51, %c0_52] : memref<8x1xf32, #tpu.memory_space<vmem>>, vector<8x1xf32>
      tpu.vector_store %arg9[%c0_51, %c0_52], %97 {strides = array<i32>} : memref<8x1xf32, #tpu.memory_space<vmem>>, vector<8x1xf32>,
    } else {
    }
    %true = arith.constant true
    %23 = arith.xori %20, %true : i1
    %24 = arith.extui %23 : i1 to i32
    %c0_i32_13 = arith.constant 0 : i32
    %25 = arith.cmpi ne, %24, %c0_i32_13 : i32
    scf.if %25 {
      %cst_16 = arith.constant dense<0xFF800000> : vector<8xf32>
      %29 = vector.multi_reduction <maximumf>, %13, %cst_16 [1] : vector<8x8xf32> to vector<8xf32>
      %30 = vector.shape_cast %29 : vector<8xf32> to vector<8x1xf32>
      %c0_17 = arith.constant 0 : index
      %c0_18 = arith.constant 0 : index
      %31 = vector.load %arg9[%c0_17, %c0_18] : memref<8x1xf32, #tpu.memory_space<vmem>>, vector<8x1xf32>
      %32 = arith.maximumf %31, %30 : vector<8x1xf32>
      %c0_19 = arith.constant 0 : index
      %c0_20 = arith.constant 0 : index
      %33 = vector.load %arg10[%c0_19, %c0_20] : memref<8x1xf32, #tpu.memory_space<vmem>>, vector<8x1xf32>
      %c0_21 = arith.constant 0 : index
      %c0_22 = arith.constant 0 : index
      %34 = vector.load %arg9[%c0_21, %c0_22] : memref<8x1xf32, #tpu.memory_space<vmem>>, vector<8x1xf32>
      %35 = arith.subf %34, %32 : vector<8x1xf32>
      %36 = math.exp %35 : vector<8x1xf32>
      %37 = arith.mulf %33, %36 : vector<8x1xf32>
      %38 = vector.broadcast %32 : vector<8x1xf32> to vector<8x8xf32>
      %39 = arith.subf %13, %38 : vector<8x8xf32>
      %40 = math.exp %39 : vector<8x8xf32>
      %cst_23 = arith.constant dense<0.000000e+00> : vector<8xf32>
      %41 = vector.multi_reduction <add>, %40, %cst_23 [1] : vector<8x8xf32> to vector<8xf32>
      %42 = vector.shape_cast %41 : vector<8xf32> to vector<8x1xf32>
      %43 = arith.addf %37, %42 : vector<8x1xf32>
      %c0_24 = arith.constant 0 : index
      %c0_25 = arith.constant 0 : index
      %44 = vector.load %arg10[%c0_24, %c0_25] : memref<8x1xf32, #tpu.memory_space<vmem>>, vector<8x1xf32>
      tpu.vector_store %arg10[%c0_24, %c0_25], %43 {strides = array<i32>} : memref<8x1xf32, #tpu.memory_space<vmem>>, vector<8x1xf32>,
      %c0_26 = arith.constant 0 : index
      %c0_27 = arith.constant 0 : index
      %45 = vector.load %arg9[%c0_26, %c0_27] : memref<8x1xf32, #tpu.memory_space<vmem>>, vector<8x1xf32>
      tpu.vector_store %arg9[%c0_26, %c0_27], %32 {strides = array<i32>} : memref<8x1xf32, #tpu.memory_space<vmem>>, vector<8x1xf32>,
    } else {
    }
    %c0_i32_14 = arith.constant 0 : i32
    %26 = arith.cmpi eq, %arg1, %c0_i32_14 : i32
    %27 = arith.extui %26 : i1 to i32
    %c0_i32_15 = arith.constant 0 : i32
    %28 = arith.cmpi ne, %27, %c0_i32_15 : i32
    scf.if %28 {
      %c0_16 = arith.constant 0 : index
      %c0_17 = arith.constant 0 : index
      %29 = vector.load %arg9[%c0_16, %c0_17] : memref<8x1xf32, #tpu.memory_space<vmem>>, vector<8x1xf32>
      %c0_18 = arith.constant 0 : index
      %c0_19 = arith.constant 0 : index
      %30 = vector.load %arg10[%c0_18, %c0_19] : memref<8x1xf32, #tpu.memory_space<vmem>>, vector<8x1xf32>
      %31 = math.log %30 : vector<8x1xf32>
      %32 = arith.addf %29, %31 : vector<8x1xf32>
      %c0_20 = arith.constant 0 : index
      %c0_21 = arith.constant 0 : index
      %33 = vector.load %arg11[%c0_20, %c0_21] : memref<8x1xf32, #tpu.memory_space<vmem>>, vector<8x1xf32>
      %34 = arith.mulf %32, %33 : vector<8x1xf32>
      %c0_22 = arith.constant 0 : index
      %c0_23 = arith.constant 0 : index
      %35 = vector.load %arg12[%c0_22, %c0_23] : memref<8x1xf32, #tpu.memory_space<vmem>>, vector<8x1xf32>
      %36 = arith.subf %34, %35 : vector<8x1xf32>
      %cst_24 = arith.constant dense<0.000000e+00> : vector<1xf32>
      %37 = vector.multi_reduction <add>, %36, %cst_24 [0] : vector<8x1xf32> to vector<1xf32>
      %38 = vector.shape_cast %37 : vector<1xf32> to vector<1x1xf32>
      %39 = vector.shape_cast %38 : vector<1x1xf32> to vector<1x1x1xf32>
      %40 = vector.broadcast %39 : vector<1x1x1xf32> to vector<1x1x128xf32>
      %c0_25 = arith.constant 0 : index
      %c0_26 = arith.constant 0 : index
      %c0_27 = arith.constant 0 : index
      %41 = vector.load %arg8[%c0_25, %c0_26, %c0_27] : memref<1x1x128xf32, #tpu.memory_space<vmem>>, vector<1x1x128xf32>
      tpu.vector_store %arg8[%c0_25, %c0_26, %c0_27], %40 {strides = array<i32>} : memref<1x1x128xf32, #tpu.memory_space<vmem>>, vector<1x1x128xf32>,
    } else {
    }
    return
  }
  func.func @transform_0(%arg0: i32, %arg1: i32) -> (i32, i32) {
    %c0_i32 = arith.constant 0 : i32
    %c0_i32_0 = arith.constant 0 : i32
    return %arg0, %c0_i32 : i32, i32
  }
  func.func @transform_1(%arg0: i32, %arg1: i32) -> (i32, i32) {
    %c0_i32 = arith.constant 0 : i32
    %c0_i32_0 = arith.constant 0 : i32
    return %c0_i32, %arg1 : i32, i32
  }
  func.func @transform_2(%arg0: i32, %arg1: i32) -> (i32, i32) {
    %c0_i32 = arith.constant 0 : i32
    %c0_i32_0 = arith.constant 0 : i32
    return %arg0, %c0_i32 : i32, i32
  }
  func.func @transform_3(%arg0: i32, %arg1: i32) -> (i32, i32) {
    %c0_i32 = arith.constant 0 : i32
    %c0_i32_0 = arith.constant 0 : i32
    return %c0_i32, %arg1 : i32, i32
  }
  func.func @transform_4(%arg0: i32, %arg1: i32) -> (i32, i32) {
    %c0_i32 = arith.constant 0 : i32
    %c0_i32_0 = arith.constant 0 : i32
    return %arg0, %c0_i32 : i32, i32
  }
  func.func @transform_5(%arg0: i32, %arg1: i32) -> (i32, i32) {
    %c0_i32 = arith.constant 0 : i32
    %c0_i32_0 = arith.constant 0 : i32
    return %arg1, %c0_i32 : i32, i32
  }
  func.func @transform_6(%arg0: i32, %arg1: i32) -> (i32, i32, i32) {
    %c0_i32 = arith.constant 0 : i32
    %c0_i32_0 = arith.constant 0 : i32
    %c0_i32_1 = arith.constant 0 : i32
    return %arg0, %c0_i32, %c0_i32_0 : i32, i32, i32
  }
}

</mosaic_0001>

<bundles_post_ra>
// kernel: tpu_custom_call.1
= control target key start
LH: loop header
LB: loop body
LE: loop exit
PB: predicated region body
PF: predicated region fallthrough
CT: control target
= control target key end

     0   :  { %vm35_vm0 = vcmask 261120   ;;  %v339_v1 = vmov 0.0   ;;  %vm340_vm1 = vmmov 0   ;;  %s419_s0 = inlined_call_operand.vmem [shape: s32[8,1], index: 0, kind: input, shape index: {}]   ;;  %s420_s1 = inlined_call_operand.vmem [shape: s32[1,8], index: 1, kind: input, shape index: {}]   ;;  %s421_s2 = inlined_call_operand.vmem [shape: f32[8,1], index: 2, kind: input, shape index: {}]   ;;  %s422_s3 = inlined_call_operand.vmem [shape: f32[1,8], index: 3, kind: input, shape index: {}]   ;;  %s423_s4 = inlined_call_operand.vmem [shape: f32[8,32], index: 4, kind: input, shape index: {}]   ;;  %s424_s5 = inlined_call_operand.vmem [shape: f32[8,32], index: 5, kind: input, shape index: {}]   ;;  %s425_s6 = inlined_call_operand.hbm [shape: f32[1,1,128], index: 6, kind: output, shape index: {}]  }
   0x1   :  { %v34_v0 = vld [vmem:[%s424_s5] sm:$0xff]  ;;  %299 = vmatprep.subr.mxu0 %v339_v1  ;;  %301 = vmatprep.mubr.msk.f32.mxu0 %vm340_vm1, %v339_v1 }
   0x2   :  { %v112_v2 = vld [vmem:[%s421_s2] sm:$0xff] }
   0x3   :  { %11 = vsyncpa [#allocation7], 0  ;;  %300 = vmatpush3.xpose.msk.msra.mxu0 %vm35_vm0, %v34_v0  ;;  %v33_v3 = vld [vmem:[%s423_s4] sm:$0xff]  ;;  %v341_v4 = vmov 0   ;;  %v113_v5 = vmul.f32 20.0, %v112_v2  ;;  %v138_v6 = vlaneseq  ;;  %vm185_vm3 = vcmask 64512  }
   0x4   :  { %309 = vset.pattern.permute.xlu0 %v341_v4  ;;  %310 = vset.pattern.permute.xlu1 %v341_v4  ;;  %v294_v9 = vld [vmem:[%s422_s3] ss:$0 sm:$0xff]  ;;  %vm28_vm4 = vcmask 7168   ;;  %v342_v18 = vmov -1e+30  }
   0x5   :  { %117 = vperm.xlu0 %309, %v113_v5   ;;  %v139_v10 = vshrl.u32 %v138_v6, 7  ;;  %v143_v11 = vand.u32 127, %v138_v6  ;;  %29 = vst.msk [vmem:[#allocation2] sm:$0xff] %vm28_vm4, %v342_v18  ;;  %30 = vst.msk [vmem:[#allocation3] sm:$0xff] %vm28_vm4, %v339_v1  ;;  %v149_v22 = vld [vmem:[%s419_s0] sm:$0xff]  ;;  %s343_s0 = smov [#allocation6]  }
   0x6   :  { %302 = vmatmul.mubr.msk.f32.vlgmr.msra.gmra.mxu0 %vm35_vm0, %v33_v3  ;;  %31 = vst.msk [vmem:[#allocation4] sm:$0xff] %vm28_vm4, %v339_v1  ;;  %32 = vst.msk [vmem:[#allocation5] sm:$0xff] %vm28_vm4, %v339_v1  ;;  %vm167_vm5 = vcmp.eq.s32.totalorder %v149_v22, 0  ;;  %v150_v31 = vld [vmem:[%s420_s1] sm:$0x1]  ;;  %s284_s1 = sshll.u32 %s343_s0, 4  ;;  %s285_s1 = int_to_ptr.vmem [resolvable:$true] %s284_s1 }
   0x7   :  { %vm146_vm2 = vcmp.eq.s32.totalorder %v139_v10, %v143_v11  ;;  %v156_v19 = vand.u32 1, %v139_v10  ;;  %v151_v20 = vadd.s32 1, %v139_v10  ;;  %v168_v27 = vsel %vm167_vm5, 4294967295, %v341_v4  ;;  %s317_s29 = scalar_lea.vmem %s285_s1, 16  ;;  %s321_s30 = scalar_lea.vmem %s285_s1, 32 }
   0x8   :  { %vm171_vm6 = vcmp.eq.s32.totalorder %v150_v31, 0  ;;  %v170_v32 = vmul.u32 %v150_v31, %v143_v11  ;;  %v176_v35 = vsub.s32 0, %v139_v10  ;;  %p318_p0 = scmp.ne.s32.totalorder %s285_s1, %s317_s29  ;;  %p322_p1 = scmp.lt.s32.totalorder %s285_s1, %s285_s1 }
   0x9   :  { %v164_v21 = vmul.u32 2, %v156_v19  ;;  %v172_v33 = vsel %vm171_vm6, 4294967294, %v341_v4  ;;  %p323_p2 = scmp.lt.s32.totalorder %s321_s30, %s317_s29 }
   0xa   :  { %v173_v34 = vadd.s32 %v172_v33, %v170_v32 }
   0xb   :  { %v165_v23 = vsub.s32 %v151_v20, %v164_v21  ;;  %p324_p3 = por %p323_p2, %p322_p1 }
   0xc   :  { %v202_v24 = vld [vmem:[#allocation2] sm:$0xff]  ;;  %v177_v38 = vrot.slane %v173_v34, %v176_v35  ;;  %v204_v55 = vld [vmem:[#allocation3] sm:$0xff] }
   0xd   :  { %v166_v25 = vmul.u32 %v165_v23, %v149_v22  ;;  %v184_v48 = vld [vmem:[#allocation4] sm:$0xff]  ;;  %v192_v51 = vld [vmem:[#allocation5] sm:$0xff]  ;;  %p325_p4 = pnand %p324_p3, %p318_p0 }
   0xf   :  { %v169_v30 = vadd.s32 %v168_v27, %v166_v25 }
  0x80   :  { %v118_v7 = vpop.permute.xlu0 %117 }
  0xc6   :  { %v108_v8 = vpop.f32.mrf.mxu0 }
  0xc7   :  { %v120_v12 = vmul.f32 %v118_v7, %v108_v8 }
  0xc8   :  { %v303_v13 = vpop.f32.mrf.mxu0 }
  0xc9   :  { %v127_v14 = vmul.f32 %v294_v9, %v120_v12 }
  0xcb   :  { %v295_v15 = vadd.f32 -2e+13, %v127_v14 }
  0xcd   :  { %v148_v16 = vsel %vm146_vm2, %v295_v15, %v127_v14 }
  0xce   :  { %v199_v17 = vsel %vm185_vm3, %v148_v16, -inf }
  0xcf   :  { %200 = vmax.xlane.f32.xlu0 %v199_v17 }
 0x158   :  { %v201_v26 = vpop.xlane.xlu0 %200 }
 0x159   :  { %v203_v28 = vmax.f32 %v202_v24, %v201_v26 }
 0x15b   :  { %v205_v29 = vsub.f32 %v202_v24, %v203_v28  ;;  %222 = vst.msk [vmem:[#allocation2] sm:$0xff] %vm28_vm4, %v203_v28  ;;  %211 = vperm.xlu1 %310, %v203_v28  }
 0x15d   :  { %v206_v47 = vmul.f32 1.442695, %v205_v29 }
 0x15f   :  { %179 = vperm.xlu1 %310, %v169_v30  }
 0x162   :  { %v255_v62 = vld [vmem:[#allocation2] sm:$0xff] }
 0x1d6   :  { %v212_v36 = vpop.permute.xlu1 %211 }
 0x1d7   :  { %v214_v37 = vsub.f32 %v148_v16, %v212_v36 }
 0x1d9   :  { %v215_v39 = vmul.f32 1.442695, %v214_v37 }
 0x1da   :  { %v180_v40 = vpop.permute.xlu1 %179 }
 0x1db   :  { %311 = vpow2.f32 %v215_v39  ;;  %vm181_vm7 = vcmp.eq.s32.totalorder %v177_v38, %v180_v40 }
 0x1dc   :  { %v296_v41 = vsel %vm181_vm7, 1.0, %v339_v1  ;;  %313 = vpow2.f32 %v206_v47 }
 0x1dd   :  { %v186_v42 = vsel %vm185_vm3, %v296_v41, 0.0  ;;  %v193_v43 = vmul.f32 %v296_v41, %v148_v16 }
 0x1de   :  { %187 = vadd.xlane.f32.xlu0 %v186_v42 }
 0x1df   :  { %v194_v44 = vsel %vm185_vm3, %v193_v43, 0.0 }
 0x1e2   :  { %195 = vadd.xlane.f32.xlu0 %v194_v44 }
 0x1e8   :  { %v312_v45 = vpop.eup %311 }
 0x1e9   :  { %v217_v46 = vsel %vm185_vm3, %v312_v45, 0.0  ;;  %v314_v54 = vpop.eup %313 }
 0x1ea   :  { %218 = vadd.xlane.f32.xlu1 %v217_v46  ;;  %v208_v56 = vmul.f32 %v314_v54, %v204_v55 }
 0x267   :  { %v188_v49 = vpop.xlane.xlu0 %187 }
 0x268   :  { %v189_v50 = vadd.f32 %v188_v49, %v184_v48 }
 0x26a   :  { %191 = vst.msk [vmem:[#allocation4] sm:$0xff] %vm28_vm4, %v189_v50 }
 0x26b   :  { %v196_v52 = vpop.xlane.xlu0 %195 }
 0x26c   :  { %v197_v53 = vadd.f32 %v196_v52, %v192_v51 }
 0x26e   :  { %198 = vst.msk [vmem:[#allocation5] sm:$0xff] %vm28_vm4, %v197_v53 }
 0x271   :  { %v260_v0 = vld [vmem:[#allocation4] sm:$0xff] }
 0x273   :  { %v219_v57 = vpop.xlane.xlu1 %218 }
 0x274   :  { %v220_v58 = vadd.f32 %v219_v57, %v208_v56 }
 0x275   :  { %v262_v2 = vld [vmem:[#allocation5] sm:$0xff] }
 0x276   :  { %221 = vst.msk [vmem:[#allocation3] sm:$0xff] %vm28_vm4, %v220_v58 }
 0x27d   :  { %v256_v59 = vld [vmem:[#allocation3] sm:$0xff] }
 0x27e   :  { %315 = vlog2.f32 %v256_v59 }
 0x28b   :  { %v316_v60 = vpop.eup %315 }
 0x28c   :  { %v258_v61 = vmul.f32 0.6931472, %v316_v60 }
 0x28e   :  { %v259_v63 = vadd.f32 %v258_v61, %v255_v62 }
 0x290   :  { %v261_v1 = vmul.f32 %v260_v0, %v259_v63 }
 0x292   :  { %v263_v3 = vsub.f32 %v261_v1, %v262_v2 }
 0x294   :  { %v265_v4 = vsel %vm28_vm4, %v263_v3, 0.0 }
 0x295   :  { %v266_v5 = vrot.slane %v265_v4, 4 }
 0x297   :  { %v267_v6 = vadd.f32 %v266_v5, %v265_v4 }
 0x299   :  { %v268_v7 = vrot.slane %v267_v6, 2 }
 0x29b   :  { %v269_v8 = vadd.f32 %v268_v7, %v267_v6 }
 0x29d   :  { %v270_v9 = vrot.slane %v269_v8, 1 }
 0x29f   :  { %v271_v10 = vadd.f32 %v270_v9, %v269_v8 }
 0x2a1   :  { %274 = vperm.xlu0 %309, %v271_v10  }
 0x31c   :  { %v275_v11 = vpop.permute.xlu0 %274 }
 0x31d   :  { %277 = vst [vmem:[#allocation6] sm:$0x1] %v275_v11 }
 0x31e   :  { %328 = shalt.err (!%p325_p4)
}
 0x31f   :  { %287 = dma.vmem_to_hbm [thread:$0]  %s285_s1, 16, %s425_s6, [#allocation7]  }
 0x320   :  { %337 = dma.done.wait [#allocation7], 16  }
 0x321   :  { %338 = vsyncadd [#allocation7], 4294967280 }
 0x322   :  { %291 = vsyncpa [#allocation7], 1 }

</bundles_post_ra>
